<compile_context>
chip_gen: v5e
topology: v5e:2x2
jax: 0.10.0
libtpu: 0.0.40
codegen_flags: <defaults>
</compile_context>

<pallas_src>
import math

import jax
import jax.numpy as jnp
from jax import lax
from jax.experimental import pallas as pl
from jax.experimental.pallas import tpu as pltpu

_LANE = 128                       # lane width: pad feature dim to a multiple
_SUBLANE = 8                      # row tiles must be a multiple of this
_TM_MAX = 256                     # default max rows per tile (MXU friendly)
_VMEM_TARGET = 40 * (1 << 20)     # conservative tile budget, fits v5e/v6e/v7x


def _round_up(x, m):
    return (x + m - 1) // m * m


# --------------------------------------------------------------------------
# Kernel: one row tile.
#   x tile   [TM, Sp]   (input dtype)
#   W^T      [Sp, Sp]   (resident, MXU dtype, [in, out] layout -> no transpose)
#   bias     [1,  Sp]   (resident, fp32)
# --------------------------------------------------------------------------
def _block_kernel(x_ref, wt_ref, b_ref, o_ref):
    x = x_ref[...]                                   # [TM, Sp]
    wt = wt_ref[...]                                 # [Sp, Sp]

    # y = x @ W^T : standard MXU contraction, fp32 accumulation.
    h = jnp.dot(x.astype(wt.dtype), wt, preferred_element_type=jnp.float32)
    h = h + b_ref[...]                               # bias add in fp32 (broadcast)

    # Exact GELU (PyTorch nn.GELU default, approximate='none').
    g = 0.5 * h * (1.0 + lax.erf(h * (1.0 / math.sqrt(2.0))))

    # Residual add in fp32, cast back to output dtype.
    o_ref[...] = (x.astype(jnp.float32) + g).astype(o_ref.dtype)


# --------------------------------------------------------------------------
# Parameter preparation (call ONCE at weight-load time; it is the lane padding
# + one-time transpose + dtype cast of the weight, not per-call work).
# --------------------------------------------------------------------------
def prepare_block_params(w, b, *, mxu_dtype=jnp.bfloat16):
    """w: [size, size] (PyTorch [out, in] layout), b: [size]."""
    size = w.shape[0]
    size_p = _round_up(max(size, _LANE), _LANE)
    pad = size_p - size
    w_p = w if pad == 0 else jnp.pad(w, ((0, pad), (0, pad)))
    wt_p = w_p.T.astype(mxu_dtype)                   # [in, out] for the MXU
    b_p = b if pad == 0 else jnp.pad(b, (0, pad))
    b_p = b_p.reshape(1, size_p).astype(jnp.float32)
    return wt_p, b_p


def _pick_tm(n, size_p, x_itemsize, w_itemsize, tm_max):
    """Largest sublane-aligned row tile whose double-buffered footprint fits."""
    tm = min(_round_up(tm_max, _SUBLANE), _round_up(n, _SUBLANE))

    def budget(t):
        return (2 * t * size_p * x_itemsize            # x tiles (double-buffered)
                + 2 * t * size_p * x_itemsize          # out tiles (double-buffered)
                + 2 * size_p * size_p * w_itemsize     # resident W (2 bufs, conservative)
                + 2 * size_p * 4)                      # bias

    while tm > _SUBLANE and budget(tm) > _VMEM_TARGET:
        tm = max(_SUBLANE, _round_up(tm // 2, _SUBLANE))
    return tm, budget(tm)


# --------------------------------------------------------------------------
# Apply the fused Linear + GELU + residual with prepared (padded) params.
# --------------------------------------------------------------------------
def block_apply(x, wt_p, b_p, *, tm_max=_TM_MAX):
    n, size = x.shape
    size_p = wt_p.shape[0]

    tm, vmem_needed = _pick_tm(n, size_p, x.dtype.itemsize,
                               wt_p.dtype.itemsize, tm_max)
    n_p = _round_up(n, tm)

    x_in = x
    if (n_p, size_p) != (n, size):
        x_in = jnp.pad(x, ((0, n_p - n), (0, size_p - size)))

    grid = (n_p // tm,)
    flops = 2 * n_p * size_p * size_p + 10 * n_p * size_p
    bytes_accessed = (2 * n_p * size_p * x.dtype.itemsize       # x read + out write
                      + size_p * size_p * wt_p.dtype.itemsize   # W read once
                      + size_p * 4)                              # bias
    vmem_limit = int(min(64 << 20, max(32 << 20, vmem_needed + (4 << 20))))

    out_full = pl.pallas_call(
        _block_kernel,
        out_shape=jax.ShapeDtypeStruct((n_p, size_p), x.dtype),
        grid_spec=pltpu.PrefetchScalarGridSpec(
            num_scalar_prefetch=0,
            grid=grid,
            in_specs=[
                pl.BlockSpec((tm, size_p), lambda i: (i, 0)),      # x row tile
                pl.BlockSpec((size_p, size_p), lambda i: (0, 0)),  # W^T (resident)
                pl.BlockSpec((1, size_p), lambda i: (0, 0)),       # bias (resident)
            ],
            out_specs=pl.BlockSpec((tm, size_p), lambda i: (i, 0)),
        ),
        compiler_params=pltpu.CompilerParams(
            dimension_semantics=("parallel",),
            vmem_limit_bytes=vmem_limit,
        ),
        cost_estimate=pl.CostEstimate(
            flops=flops,
            transcendentals=n_p * size_p,
            bytes_accessed=bytes_accessed,
        ),
    )(x_in, wt_p, b_p)

    if (n_p, size_p) != (n, size):
        return out_full[:n, :size]
    return out_full


def block_forward(x, w, b, *, mxu_dtype=jnp.bfloat16, tm_max=_TM_MAX):
    """Convenience wrapper: x [N,size] fp32, w [size,size] (PyTorch layout), b [size].
    For repeated calls, hoist prepare_block_params() out of the hot path."""
    wt_p, b_p = prepare_block_params(w, b, mxu_dtype=mxu_dtype)
    return block_apply(x, wt_p, b_p, tm_max=tm_max)


def block_reference(x, w, b):
    """Pure-JAX reference matching torch semantics (exact GELU)."""
    h = x @ w.T + b
    g = 0.5 * h * (1.0 + lax.erf(h / math.sqrt(2.0)))
    return x + g


if __name__ == "__main__":
    key = jax.random.PRNGKey(0)

    # ---- primary test: module-consistent small shapes (size=32, batch=8) ----
    size, n = 32, 8
    kx, kw, kb = jax.random.split(key, 3)
    bound = 1.0 / math.sqrt(size)
    x = jax.random.normal(kx, (n, size), dtype=jnp.float32)
    w = jax.random.uniform(kw, (size, size), minval=-bound, maxval=bound,
                           dtype=jnp.float32)
    b = jax.random.uniform(kb, (size,), minval=-bound, maxval=bound,
                           dtype=jnp.float32)
    ref = block_reference(x, w, b)

    # fp32 MXU path: exact semantics, tight tolerance.
    out_fp32 = jax.block_until_ready(block_forward(x, w, b, mxu_dtype=jnp.float32))
    assert out_fp32.shape == (n, size)
    assert jnp.allclose(out_fp32, ref, atol=1e-5, rtol=1e-5), "fp32 mismatch"

    # bf16 MXU path (default perf config): fp32 accumulate, looser tolerance.
    out_bf16 = jax.block_until_ready(block_forward(x, w, b))
    assert jnp.allclose(out_bf16, ref, atol=5e-2, rtol=5e-2), "bf16 mismatch"

    # ---- secondary test: exercise row tiling across a multi-tile grid ----
    size2, n2 = 256, 512
    kx2, kw2, kb2 = jax.random.split(jax.random.PRNGKey(1), 3)
    bound2 = 1.0 / math.sqrt(size2)
    x2 = jax.random.normal(kx2, (n2, size2), dtype=jnp.float32)
    w2 = jax.random.uniform(kw2, (size2, size2), minval=-bound2, maxval=bound2,
                            dtype=jnp.float32)
    b2 = jax.random.uniform(kb2, (size2,), minval=-bound2, maxval=bound2,
                            dtype=jnp.float32)
    ref2 = block_reference(x2, w2, b2)
    out2 = jax.block_until_ready(
        block_forward(x2, w2, b2, mxu_dtype=jnp.float32, tm_max=128))  # grid=(4,)
    assert jnp.allclose(out2, ref2, atol=1e-4, rtol=1e-4), "tiled fp32 mismatch"
    out2b = jax.block_until_ready(block_forward(x2, w2, b2, tm_max=128))
    assert jnp.allclose(out2b, ref2, atol=5e-2, rtol=5e-2), "tiled bf16 mismatch"

    print("KERNEL_OK")
</pallas_src>

<mosaic_0001>
module attributes {stable_mosaic.version = 11 : i64} {
  func.func @_block_kernel(%arg0: i32, %arg1: memref<8x128xf32, #tpu.memory_space<vmem>>, %arg2: memref<128x128xf32, #tpu.memory_space<vmem>>, %arg3: memref<1x128xf32, #tpu.memory_space<vmem>>, %arg4: memref<8x128xf32, #tpu.memory_space<vmem>>) attributes {dimension_semantics = [#tpu.dimension_semantics<parallel>], iteration_bounds = array<i64: 1>, scalar_prefetch = 0 : i64, scratch_operands = 0 : i64, tpu.core_type = #tpu.core_type<tc>, window_params = [{transform_indices = @transform_0, window_bounds = array<i64: 8, 128>}, {pipeline_mode = #tpu.pipeline_mode<synchronous>, transform_indices = @transform_1, window_bounds = array<i64: 128, 128>}, {pipeline_mode = #tpu.pipeline_mode<synchronous>, transform_indices = @transform_2, window_bounds = array<i64: 1, 128>}, {transform_indices = @transform_3, window_bounds = array<i64: 8, 128>}]} {
    %c0 = arith.constant 0 : index
    %c0_0 = arith.constant 0 : index
    %0 = vector.load %arg1[%c0, %c0_0] : memref<8x128xf32, #tpu.memory_space<vmem>>, vector<8x128xf32>
    %c0_1 = arith.constant 0 : index
    %c0_2 = arith.constant 0 : index
    %1 = vector.load %arg2[%c0_1, %c0_2] : memref<128x128xf32, #tpu.memory_space<vmem>>, vector<128x128xf32>
    %cst = arith.constant dense<0.000000e+00> : vector<8x128xf32>
    %2 = tpu.matmul %0, %1, %cst {dimension_numbers = #tpu.dot_dimension_numbers<[1], [0], [0], [1], [0, 0, 1, 1], [], []>} : vector<8x128xf32>, vector<128x128xf32>, vector<8x128xf32> -> vector<8x128xf32>
    %c0_3 = arith.constant 0 : index
    %c0_4 = arith.constant 0 : index
    %3 = vector.load %arg3[%c0_3, %c0_4] : memref<1x128xf32, #tpu.memory_space<vmem>>, vector<1x128xf32>
    %4 = vector.broadcast %3 : vector<1x128xf32> to vector<8x128xf32>
    %5 = arith.addf %2, %4 : vector<8x128xf32>
    %cst_5 = arith.constant 5.000000e-01 : f32
    %6 = vector.broadcast %cst_5 : f32 to vector<8x128xf32>
    %7 = arith.mulf %6, %5 : vector<8x128xf32>
    %cst_6 = arith.constant 0.707106769 : f32
    %8 = vector.broadcast %cst_6 : f32 to vector<8x128xf32>
    %9 = arith.mulf %5, %8 : vector<8x128xf32>
    %10 = math.erf %9 : vector<8x128xf32>
    %cst_7 = arith.constant 1.000000e+00 : f32
    %11 = vector.broadcast %cst_7 : f32 to vector<8x128xf32>
    %12 = arith.addf %11, %10 : vector<8x128xf32>
    %13 = arith.mulf %7, %12 : vector<8x128xf32>
    %14 = arith.addf %0, %13 : vector<8x128xf32>
    %c0_8 = arith.constant 0 : index
    %c0_9 = arith.constant 0 : index
    %15 = vector.load %arg4[%c0_8, %c0_9] : memref<8x128xf32, #tpu.memory_space<vmem>>, vector<8x128xf32>
    tpu.vector_store %arg4[%c0_8, %c0_9], %14 {strides = array<i32>} : memref<8x128xf32, #tpu.memory_space<vmem>>, vector<8x128xf32>,
    return
  }
  func.func @transform_0(%arg0: i32) -> (i32, i32) {
    %c0_i32 = arith.constant 0 : i32
    %c0_i32_0 = arith.constant 0 : i32
    return %arg0, %c0_i32 : i32, i32
  }
  func.func @transform_1(%arg0: i32) -> (i32, i32) {
    %c0_i32 = arith.constant 0 : i32
    %c0_i32_0 = arith.constant 0 : i32
    %c0_i32_1 = arith.constant 0 : i32
    return %c0_i32, %c0_i32_0 : i32, i32
  }
  func.func @transform_2(%arg0: i32) -> (i32, i32) {
    %c0_i32 = arith.constant 0 : i32
    %c0_i32_0 = arith.constant 0 : i32
    %c0_i32_1 = arith.constant 0 : i32
    return %c0_i32, %c0_i32_0 : i32, i32
  }
  func.func @transform_3(%arg0: i32) -> (i32, i32) {
    %c0_i32 = arith.constant 0 : i32
    %c0_i32_0 = arith.constant 0 : i32
    return %arg0, %c0_i32 : i32, i32
  }
}

</mosaic_0001>

<bundles_post_ra>
// kernel: tpu_custom_call.1
= control target key start
LH: loop header
LB: loop body
LE: loop exit
PB: predicated region body
PF: predicated region fallthrough
CT: control target
= control target key end

     0   :  { %8 = vsyncpa [#allocation3], 0  ;;  %s274_s0 = inlined_call_operand.hbm [shape: f32[8,128], index: 0, kind: input, shape index: {}]   ;;  %s275_s1 = inlined_call_operand.hbm [shape: f32[128,128], index: 1, kind: input, shape index: {}]   ;;  %s276_s2 = inlined_call_operand.vmem [shape: f32[1,128], index: 2, kind: input, shape index: {}]   ;;  %s277_s3 = inlined_call_operand.hbm [shape: f32[8,128], index: 3, kind: output, shape index: {}]  }
   0x1   :  { %9 = vsyncpa [#allocation6], 0 }
   0x2   :  { %10 = vsyncpa [#allocation4], 0  ;;  %s16_s14 = sshll.u32 %s274_s0, 4  ;;  %s237_s15 = smov [#allocation2]   ;;  %s17_s14 = int_to_ptr.hbm [resolvable:$true] %s16_s14 }
   0x3   :  { %s18_s16 = sshll.u32 %s237_s15, 4  ;;  %s26_s19 = sshll.u32 %s275_s1, 4  ;;  %s19_s16 = int_to_ptr.vmem [resolvable:$true] %s18_s16  ;;  %s27_s19 = int_to_ptr.hbm [resolvable:$true] %s26_s19 }
   0x4   :  { %21 = dma.hbm_to_vmem [thread:$0]  %s17_s14, 128, %s19_s16, [#allocation3]  }
   0x5   :  { %s238_s20 = smov [#allocation5]   ;;  %s239_s22 = smov 128  }
   0x6   :  { %s28_s21 = sshll.u32 %s238_s20, 4  ;;  %s240_s23 = smov 8   ;;  %s29_s21 = int_to_ptr.vmem [resolvable:$true] %s28_s21 }
   0x7   :  { %34 = dma.hbm_to_vmem [thread:$0]  %s27_s19, 2048, %s29_s21, [#allocation6], %s239_s22, %s239_s22, %s240_s23  }
   0x8   :  { %231 = dma.done.wait [#allocation3], 128  }
   0x9   :  { %232 = vsyncadd [#allocation3], 4294967168 }
   0xa   :  { %233 = dma.done.wait [#allocation6], 2048  }
   0xb   :  { %234 = vsyncadd [#allocation6], 4294965248  ;;  %v61_v0 = vld [vmem:[#allocation5 + $0x78] sm:$0xff]  ;;  %v60_v1 = vld [vmem:[#allocation5 + $0x70] sm:$0xff]  ;;  %s139_s27 = sshll.u32 %s277_s3, 4  ;;  %s140_s27 = int_to_ptr.hbm [resolvable:$true] %s139_s27 }
   0xc   :  { %66 = vmatpush.msra.mxu0 %v61_v0  ;;  %v59_v2 = vld [vmem:[#allocation5 + $0x68] sm:$0xff]  ;;  %v58_v3 = vld [vmem:[#allocation5 + $0x60] sm:$0xff]  ;;  %v57_v4 = vld [vmem:[#allocation5 + $0x58] sm:$0xff] }
   0xd   :  { %v56_v5 = vld [vmem:[#allocation5 + $0x50] sm:$0xff]  ;;  %v55_v6 = vld [vmem:[#allocation5 + $0x48] sm:$0xff]  ;;  %v54_v7 = vld [vmem:[#allocation5 + $0x40] sm:$0xff] }
   0xe   :  { %67 = vmatpush.msra.mxu0 %v60_v1  ;;  %v53_v8 = vld [vmem:[#allocation5 + $0x38] sm:$0xff]  ;;  %v52_v9 = vld [vmem:[#allocation5 + $0x30] sm:$0xff]  ;;  %v51_v10 = vld [vmem:[#allocation5 + $0x28] sm:$0xff] }
   0xf   :  { %v50_v11 = vld [vmem:[#allocation5 + $0x20] sm:$0xff]  ;;  %v49_v12 = vld [vmem:[#allocation5 + $0x18] sm:$0xff]  ;;  %v48_v13 = vld [vmem:[#allocation5 + $0x10] sm:$0xff] }
  0x10   :  { %68 = vmatpush.msra.mxu0 %v59_v2  ;;  %v47_v14 = vld [vmem:[#allocation5 + $0x8] sm:$0xff]  ;;  %v46_v15 = vld [vmem:[#allocation5] sm:$0xff]  ;;  %v45_v16 = vld [vmem:[#allocation2] sm:$0xff] }
  0x11   :  { %v156_v17 = vld [vmem:[%s276_s2] ss:$0 sm:$0xff]  ;;  %s241_s2 = smov [#allocation7]  }
  0x12   :  { %69 = vmatpush.msra.mxu0 %v58_v3  ;;  %s137_s24 = sshll.u32 %s241_s2, 4  ;;  %s138_s24 = int_to_ptr.vmem [resolvable:$true] %s137_s24 }
  0x14   :  { %70 = vmatpush.msra.mxu0 %v57_v4 }
  0x16   :  { %71 = vmatpush.msra.mxu0 %v56_v5 }
  0x18   :  { %72 = vmatpush.msra.mxu0 %v55_v6 }
  0x1a   :  { %73 = vmatpush.msra.mxu0 %v54_v7 }
  0x1c   :  { %74 = vmatpush.msra.mxu0 %v53_v8 }
  0x1e   :  { %75 = vmatpush.msra.mxu0 %v52_v9 }
  0x20   :  { %76 = vmatpush.msra.mxu0 %v51_v10 }
  0x22   :  { %77 = vmatpush.msra.mxu0 %v50_v11 }
  0x24   :  { %78 = vmatpush.msra.mxu0 %v49_v12 }
  0x26   :  { %79 = vmatpush.msra.mxu0 %v48_v13 }
  0x28   :  { %80 = vmatpush.msra.mxu0 %v47_v14 }
  0x2a   :  { %81 = vmatpush.msra.mxu0 %v46_v15 }
  0x2b   :  { %82 = vmatmul.f32.vlgmr.msra.gmra.mxu0 %v45_v16 }
  0xa8   :  { %v83_v18 = vpop.f32.mrf.mxu0 }
  0xa9   :  { %v84_v19 = vadd.f32 %v156_v17, %v83_v18 }
  0xab   :  { %v87_v20 = vmul.f32 0.70710677, %v84_v19  ;;  %v86_v56 = vmul.f32 0.5, %v84_v19 }
  0xad   :  { %v88_v21 = vmul.f32 %v87_v20, %v87_v20 }
  0xaf   :  { %v89_v22 = vmin.f32 %v88_v21, 16.0 }
  0xb1   :  { %v90_v23 = vmul.f32 2.1237322e-06, %v89_v22  ;;  %v101_v24 = vmul.f32 3.8918573e-05, %v89_v22 }
  0xb3   :  { %v91_v25 = vadd.f32 0.00028619796, %v90_v23  ;;  %v102_v26 = vadd.f32 0.001143296, %v101_v24 }
  0xb5   :  { %v92_v27 = vmul.f32 %v91_v25, %v89_v22  ;;  %v103_v28 = vmul.f32 %v102_v26, %v89_v22 }
  0xb7   :  { %v104_v29 = vadd.f32 0.014752088, %v103_v28  ;;  %v93_v30 = vadd.f32 0.0036580483, %v92_v27 }
  0xb9   :  { %v105_v31 = vmul.f32 %v104_v29, %v89_v22  ;;  %v94_v33 = vmul.f32 %v93_v30, %v89_v22 }
  0xbb   :  { %v106_v32 = vadd.f32 0.112945676, %v105_v31  ;;  %v95_v36 = vadd.f32 0.05243302, %v94_v33 }
  0xbd   :  { %v107_v34 = vmul.f32 %v106_v32, %v89_v22  ;;  %v96_v39 = vmul.f32 %v95_v36, %v89_v22 }
  0xbf   :  { %v108_v35 = vadd.f32 0.4994258, %v107_v34  ;;  %v97_v40 = vadd.f32 0.18741608, %v96_v39 }
  0xc1   :  { %v109_v37 = vmul.f32 %v108_v35, %v89_v22  ;;  %v98_v42 = vmul.f32 %v97_v40, %v89_v22 }
  0xc3   :  { %v110_v38 = vadd.f32 1.0, %v109_v37  ;;  %v99_v46 = vadd.f32 1.1283791, %v98_v42 }
  0xc5   :  { %157 = vrcp.f32 %v110_v38  ;;  %v122_v45 = vand.u32 2147483648, %v110_v38  ;;  %v120_v48 = vand.u32 2147483647, %v110_v38  ;;  %vm116_vm1 = vweird.f32 %v110_v38 }
  0xc6   :  { %v100_v51 = vmul.f32 %v99_v46, %v87_v20 }
  0xc7   :  { %v123_v50 = vor.u32 1.1754944e-38, %v122_v45  ;;  %vm121_vm3 = vcmp.eq.f32.partialorder %v120_v48, 8.507059e+37 }
  0xcb   :  { %v158_v41 = vpop.eup %157 }
  0xcc   :  { %v112_v43 = vmul.f32 %v158_v41, %v110_v38  ;;  %vm117_vm0 = vweird.f32 %v158_v41 }
  0xcd   :  { %vm118_vm2 = vmor %vm116_vm1, %vm117_vm0 }
  0xce   :  { %v113_v44 = vsub.f32 1.0, %v112_v43 }
  0xd0   :  { %v114_v47 = vmul.f32 %v158_v41, %v113_v44 }
  0xd2   :  { %v115_v49 = vadd.f32 %v158_v41, %v114_v47 }
  0xd4   :  { %v119_v52 = vsel %vm118_vm2, %v158_v41, %v115_v49 }
  0xd5   :  { %v124_v53 = vsel %vm121_vm3, %v123_v50, %v119_v52 }
  0xd6   :  { %v125_v54 = vmul.f32 %v124_v53, %v100_v51 }
  0xd8   :  { %v150_v55 = vclamps-f32 %v125_v54, 1.0 }
  0xda   :  { %v128_v57 = vadd.f32 1.0, %v150_v55 }
  0xdc   :  { %v129_v58 = vmul.f32 %v128_v57, %v86_v56 }
  0xde   :  { %v130_v59 = vadd.f32 %v129_v58, %v45_v16 }
  0xe0   :  { %131 = vst [vmem:[#allocation7] sm:$0xff] %v130_v59 }
  0xe1   :  { %142 = dma.vmem_to_hbm [thread:$0]  %s138_s24, 128, %s140_s27, [#allocation4]  }
  0xe2   :  { %235 = dma.done.wait [#allocation4], 128  }
  0xe3   :  { %236 = vsyncadd [#allocation4], 4294967168 }
  0xe4   :  { %147 = vsyncpa [#allocation3], 1 }
  0xe5   :  { %148 = vsyncpa [#allocation6], 1 }
  0xe6   :  { %149 = vsyncpa [#allocation4], 1 }

</bundles_post_ra>
